<compile_context>
chip_gen: v7x
topology: tpu7x:2x2x1
jax: 0.10.0
libtpu: 0.0.40
codegen_flags: <defaults>
</compile_context>

<pallas_src>
import functools

import jax
import jax.numpy as jnp
from jax import lax
from jax.experimental import pallas as pl
from jax.experimental.pallas import tpu as pltpu


def _ru(x, m):
    return (x + m - 1) // m * m


_RESIDENT_W_BYTES = 6 * 1024 * 1024          # pin weight in VMEM below this
_VMEM_LIMIT = 48 * 1024 * 1024               # <= v7x physical 64 MiB


def _pick_tile(dim, max_tile, lane=False):
    """Pick a tile for `dim` (already aligned). Prefers divisors (no padding)."""
    align = 128 if lane else 8
    if dim <= max_tile:
        return dim, dim
    best = None
    for t in range(max_tile, align - 1, -align):
        if dim % t == 0:
            best = t
            break
    if best is not None and best >= max_tile // 4:
        return best, dim
    return max_tile, _ru(dim, max_tile)       # rare: accept some padding


def _pick_tk(K):
    """K tiling. Never zero-pads K for realistic conv shapes."""
    if K <= 2048:
        return K, K, True                      # single K step, tk == K exactly
    if K % 128 == 0:
        for t in (512, 384, 640, 256, 128):    # prefer 256-aligned (v6e/v7x MXU)
            if K % t == 0:
                return t, K, False
    return 512, _ru(K, 512), False


# --------------------------------------------------------------------------
# Pallas kernel: tiled GEMM with optional fused bias / LeakyReLU /
# (shortcut + gamma * result) epilogue and optional VMEM-resident weight.
# --------------------------------------------------------------------------
def _gemm_kernel(*refs, has_bias, leaky_slope, fused, single_k, w_resident,
                 tk, tn, n_j):
    if single_k:
        in_refs, out_ref = refs[:-1], refs[-1]
        acc_ref = None
    else:
        in_refs, out_ref, acc_ref = refs[:-2], refs[-2], refs[-1]
    x_ref, w_ref = in_refs[0], in_refs[1]
    pos = 2
    b_ref = None
    if has_bias:
        b_ref = in_refs[pos]
        pos += 1
    sc_ref = g_ref = None
    if fused:
        sc_ref, g_ref = in_refs[pos], in_refs[pos + 1]

    j = pl.program_id(1)
    k = None if single_k else pl.program_id(2)

    def w_block():
        if not w_resident:
            return w_ref[...]                      # streamed (tk, tn) block
        # Weight is fully resident in VMEM; take the (k, j) sub-tile with
        # aligned dynamic slices (sublane offset multiple of tk, lane of tn).
        if single_k:
            if n_j == 1:
                return w_ref[...]
            return w_ref[:, pl.ds(pl.multiple_of(j * tn, tn), tn)]
        kk = pl.multiple_of(k * tk, tk)
        if n_j == 1:
            return w_ref[pl.ds(kk, tk), :]
        return w_ref[pl.ds(kk, tk), pl.ds(pl.multiple_of(j * tn, tn), tn)]

    def epilogue(acc):
        if has_bias:
            acc = acc + b_ref[...]                 # (1, tn) broadcast
        if leaky_slope is not None:
            acc = jnp.where(acc >= 0.0, acc, leaky_slope * acc)
        if fused:                                  # shortcut + gamma * residual
            acc = sc_ref[...].astype(jnp.float32) + g_ref[0] * acc
        return acc.astype(out_ref.dtype)

    if single_k:
        out_ref[...] = epilogue(
            jnp.dot(x_ref[...], w_block(), preferred_element_type=jnp.float32))
    else:
        @pl.when(k == 0)
        def _():
            acc_ref[...] = jnp.zeros_like(acc_ref)

        acc_ref[...] += jnp.dot(x_ref[...], w_block(),
                                preferred_element_type=jnp.float32)

        @pl.when(k == pl.num_programs(2) - 1)
        def _():
            out_ref[...] = epilogue(acc_ref[...])


def conv_gemm(x2d, w2d, *, bias=None, leaky_slope=None,
              shortcut=None, gamma=None, out_dtype=jnp.float32):
    """(M,K) @ (K,N) on the MXU (bf16 operands, f32 accumulation).

    Optional fused epilogue on the final K step: bias add, LeakyReLU, and
    resD's combine `shortcut + gamma * result` (gamma read from SMEM).
    """
    M, K = x2d.shape
    K2, N = w2d.shape
    assert K == K2
    fused = shortcut is not None

    # ---- tile selection (lane-dense N, sublane-aligned M, no K zero-pad) ----
    Np = _ru(N, 128)
    Mp = _ru(M, 8)
    tn, Np = _pick_tile(Np, 512, lane=True)
    tm, Mp = _pick_tile(Mp, 1024, lane=False)
    tk, Kp, single_k = _pick_tk(K)
    nk = Kp // tk

    # v7x megacore: keep at least 2 parallel (i,j) tiles when possible.
    if (Mp // tm) * (Np // tn) < 2 and tm >= 16 and tm % 16 == 0:
        tm //= 2
    grid_m, grid_n = Mp // tm, Np // tn

    # Pin the weight in VMEM when it is small and would otherwise be
    # re-fetched once per M-tile.
    w_resident = (Kp * Np * 2 <= _RESIDENT_W_BYTES) and grid_m > 1

    # ---- operands (bf16, padded only when strictly necessary) ----
    x_p = x2d.astype(jnp.bfloat16)
    if (Mp, Kp) != (M, K):
        x_p = jnp.pad(x_p, ((0, Mp - M), (0, Kp - K)))
    w_p = w2d.astype(jnp.bfloat16)
    if (Kp, Np) != (K, N):
        w_p = jnp.pad(w_p, ((0, Kp - K), (0, Np - N)))

    inputs = [x_p, w_p]
    in_specs = [pl.BlockSpec((tm, tk), lambda i, j, k: (i, k))]
    if w_resident:
        in_specs.append(pl.BlockSpec((Kp, Np), lambda i, j, k: (0, 0)))
    else:
        in_specs.append(pl.BlockSpec((tk, tn), lambda i, j, k: (k, j)))

    bytes_accessed = (Mp * Kp * 2 + Kp * Np * 2
                      + Mp * Np * jnp.dtype(out_dtype).itemsize)
    if bias is not None:
        b_p = bias.astype(jnp.float32).reshape(1, N)
        if Np != N:
            b_p = jnp.pad(b_p, ((0, 0), (0, Np - N)))
        inputs.append(b_p)
        in_specs.append(pl.BlockSpec((1, tn), lambda i, j, k: (0, j)))
        bytes_accessed += Np * 4
    if fused:
        assert shortcut.shape == (M, N)
        sc_p = shortcut.astype(jnp.bfloat16)
        if (Mp, Np) != (M, N):
            sc_p = jnp.pad(sc_p, ((0, Mp - M), (0, Np - N)))
        g = jnp.asarray(gamma, jnp.float32).reshape(1)
        inputs += [sc_p, g]
        in_specs += [
            pl.BlockSpec((tm, tn), lambda i, j, k: (i, j)),
            pl.BlockSpec(memory_space=pltpu.MemorySpace.SMEM),   # gamma scalar
        ]
        bytes_accessed += Mp * Np * 2

    kernel = functools.partial(
        _gemm_kernel, has_bias=bias is not None, leaky_slope=leaky_slope,
        fused=fused, single_k=single_k, w_resident=w_resident,
        tk=tk, tn=tn, n_j=grid_n)

    out = pl.pallas_call(
        kernel,
        out_shape=jax.ShapeDtypeStruct((Mp, Np), out_dtype),
        grid=(grid_m, grid_n, nk),
        in_specs=in_specs,
        out_specs=pl.BlockSpec((tm, tn), lambda i, j, k: (i, j)),
        scratch_shapes=[] if single_k else [pltpu.VMEM((tm, tn), jnp.float32)],
        compiler_params=pltpu.CompilerParams(
            dimension_semantics=("parallel", "parallel", "arbitrary"),
            vmem_limit_bytes=_VMEM_LIMIT),
        cost_estimate=pl.CostEstimate(flops=2 * Mp * Np * Kp, transcendentals=0,
                                      bytes_accessed=int(bytes_accessed)),
    )(*inputs)
    if (Mp, Np) != (M, N):
        out = out[:M, :N]
    return out


# --------------------------------------------------------------------------
# Glue: im2col (bf16 at source), weight layout, module forward
# --------------------------------------------------------------------------
def im2col(x_nhwc, kh, kw, stride, pad):
    N, H, W, C = x_nhwc.shape
    if pad:
        x_nhwc = jnp.pad(x_nhwc, ((0, 0), (pad, pad), (pad, pad), (0, 0)))
    Ho = (H + 2 * pad - kh) // stride + 1
    Wo = (W + 2 * pad - kw) // stride + 1
    cols = []
    for i in range(kh):
        for j in range(kw):
            cols.append(x_nhwc[:, i:i + stride * Ho:stride,
                               j:j + stride * Wo:stride, :])
    patches = jnp.stack(cols, axis=3)               # (N, Ho, Wo, kh*kw, C)
    return patches.reshape(N * Ho * Wo, kh * kw * C)


def w_to_gemm(w_oihw):
    # OIHW -> (kh*kw*Cin, Cout) in bf16, matching the im2col flattening order.
    o = w_oihw.shape[0]
    return jnp.transpose(w_oihw, (2, 3, 1, 0)).reshape(-1, o).astype(jnp.bfloat16)


def resd_forward(x_nchw, params, downsample=True):
    assert downsample, \
        "downsample=False is shape-inconsistent with the stride-2 residual branch"
    # NCHW -> NHWC, bf16 at the source (all downstream buffers are half-width).
    x = jnp.transpose(x_nchw, (0, 2, 3, 1)).astype(jnp.bfloat16)
    N, H, W, Cin = x.shape
    fout = params["w_r1"].shape[0]
    learned_shortcut = (Cin != fout)
    Ho, Wo = H // 2, W // 2
    M = N * Ho * Wo

    # ---- shortcut: avg_pool2d(2) first (commutes exactly with the 1x1 conv),
    #      then the (now 4x smaller) 1x1 conv GEMM with fused bias.
    pooled = x.astype(jnp.float32).reshape(N, Ho, 2, Wo, 2, Cin).mean(axis=(2, 4))
    pooled = pooled.astype(jnp.bfloat16)
    if learned_shortcut:
        sc2d = conv_gemm(pooled.reshape(M, Cin), w_to_gemm(params["w_s"]),
                         bias=params["b_s"], out_dtype=jnp.bfloat16)
    else:
        sc2d = pooled.reshape(M, Cin)                # Cin == fout here

    # ---- residual: conv 4x4 s2 p1 + LeakyReLU(0.2), then conv 3x3 s1 p1 +
    #      LeakyReLU(0.2) with `shortcut + gamma * residual` fused into the
    #      second GEMM's epilogue.
    p1 = im2col(x, 4, 4, 2, 1)
    y1 = conv_gemm(p1, w_to_gemm(params["w_r1"]), leaky_slope=0.2,
                   out_dtype=jnp.bfloat16)
    y1 = y1.reshape(N, Ho, Wo, fout)
    p2 = im2col(y1, 3, 3, 1, 1)
    out2d = conv_gemm(p2, w_to_gemm(params["w_r2"]), leaky_slope=0.2,
                      shortcut=sc2d, gamma=params["gamma"],
                      out_dtype=jnp.float32)
    out = out2d.reshape(N, Ho, Wo, fout)
    return jnp.transpose(out, (0, 3, 1, 2))          # back to NCHW (module layout)


# --------------------------------------------------------------------------
# Pure-JAX reference (correctness check only)
# --------------------------------------------------------------------------
def resd_reference(x_nchw, params, downsample=True):
    def conv(x, w, stride, pad):
        dn = lax.conv_dimension_numbers(x.shape, w.shape, ("NCHW", "OIHW", "NCHW"))
        return lax.conv_general_dilated(x, w, (stride, stride),
                                        [(pad, pad), (pad, pad)],
                                        dimension_numbers=dn)

    y = conv(x_nchw, params["w_r1"], 2, 1)
    y = jnp.where(y >= 0, y, 0.2 * y)
    y = conv(y, params["w_r2"], 1, 1)
    residual = jnp.where(y >= 0, y, 0.2 * y)

    fin, fout = x_nchw.shape[1], params["w_r1"].shape[0]
    sc = x_nchw
    if fin != fout:                                  # learned_shortcut only
        sc = conv(sc, params["w_s"], 1, 0) + params["b_s"].reshape(1, -1, 1, 1)
    if downsample:
        Nn, C, H, W = sc.shape
        sc = sc.reshape(Nn, C, H // 2, 2, W // 2, 2).mean(axis=(3, 5))
    return sc + params["gamma"] * residual


# --------------------------------------------------------------------------
if __name__ == "__main__":
    key = jax.random.PRNGKey(0)
    fin, fout, N, H, W = 4, 8, 2, 16, 16
    k1, k2, k3, k4, k5, k6, k7, k8, k9 = jax.random.split(key, 9)

    params = {
        "w_r1": jax.random.normal(k1, (fout, fin, 4, 4), jnp.float32) * 0.1,
        "w_r2": jax.random.normal(k2, (fout, fout, 3, 3), jnp.float32) * 0.1,
        "w_s": jax.random.normal(k3, (fout, fin, 1, 1), jnp.float32) * 0.1,
        "b_s": jax.random.normal(k4, (fout,), jnp.float32) * 0.1,
        # gamma initializes to 0 in the module; nonzero here so the check
        # actually exercises the residual branch and the fused epilogue.
        "gamma": jnp.asarray(0.5, jnp.float32),
    }
    x = jax.random.normal(k5, (N, fin, H, W), jnp.float32)

    out = resd_forward(x, params, downsample=True)
    jax.block_until_ready(out)
    ref = resd_reference(x, params, downsample=True)
    assert out.shape == ref.shape == (N, fout, H // 2, W // 2)
    # bf16 MXU operands (and bf16 shortcut operand) with f32 accumulation.
    assert jnp.allclose(out, ref, atol=5e-2, rtol=5e-2), \
        float(jnp.max(jnp.abs(out - ref)))

    # Multi-K accumulator path with a VMEM-resident weight (K=2304 -> tk=384,
    # in-kernel (k, j) weight slicing). Not reachable at the tiny conv shapes.
    a = jax.random.normal(k6, (2048, 2304), jnp.float32)
    b = jax.random.normal(k7, (2304, 768), jnp.float32)
    got = conv_gemm(a, b)
    want = jnp.dot(a.astype(jnp.bfloat16).astype(jnp.float32),
                   b.astype(jnp.bfloat16).astype(jnp.float32),
                   precision=lax.Precision.HIGHEST)
    jax.block_until_ready(got)
    assert jnp.allclose(got, want, atol=5e-2, rtol=1e-2), \
        float(jnp.max(jnp.abs(got - want)))

    # Multi-K path with a streamed (too-big-to-pin) weight.
    a2 = jax.random.normal(k8, (256, 2560), jnp.float32)
    b2 = jax.random.normal(k9, (2560, 1280), jnp.float32)
    got2 = conv_gemm(a2, b2)
    want2 = jnp.dot(a2.astype(jnp.bfloat16).astype(jnp.float32),
                    b2.astype(jnp.bfloat16).astype(jnp.float32),
                    precision=lax.Precision.HIGHEST)
    jax.block_until_ready(got2)
    assert jnp.allclose(got2, want2, atol=5e-2, rtol=1e-2), \
        float(jnp.max(jnp.abs(got2 - want2)))

    print("KERNEL_OK")
</pallas_src>

<mosaic_0001>
module attributes {stable_mosaic.version = 11 : i64} {
  func.func @_gemm_kernel(%arg0: i32, %arg1: i32, %arg2: i32, %arg3: memref<64x4xbf16, #tpu.memory_space<vmem>>, %arg4: memref<4x128xbf16, #tpu.memory_space<vmem>>, %arg5: memref<1x128xf32, #tpu.memory_space<vmem>>, %arg6: memref<64x128xbf16, #tpu.memory_space<vmem>>) attributes {dimension_semantics = [#tpu.dimension_semantics<parallel>, #tpu.dimension_semantics<parallel>, #tpu.dimension_semantics<arbitrary>], iteration_bounds = array<i64: 2, 1, 1>, scalar_prefetch = 0 : i64, scratch_operands = 0 : i64, tpu.core_type = #tpu.core_type<tc>, window_params = [{transform_indices = @transform_0, window_bounds = array<i64: 64, 4>}, {pipeline_mode = #tpu.pipeline_mode<synchronous>, transform_indices = @transform_1, window_bounds = array<i64: 4, 128>}, {transform_indices = @transform_2, window_bounds = array<i64: 1, 128>}, {transform_indices = @transform_3, window_bounds = array<i64: 64, 128>}]} {
    %c0 = arith.constant 0 : index
    %c0_0 = arith.constant 0 : index
    %0 = vector.load %arg3[%c0, %c0_0] : memref<64x4xbf16, #tpu.memory_space<vmem>>, vector<64x4xbf16>
    %c0_1 = arith.constant 0 : index
    %c0_2 = arith.constant 0 : index
    %1 = vector.load %arg4[%c0_1, %c0_2] : memref<4x128xbf16, #tpu.memory_space<vmem>>, vector<4x128xbf16>
    %cst = arith.constant dense<0.000000e+00> : vector<64x128xf32>
    %2 = tpu.matmul %0, %1, %cst {dimension_numbers = #tpu.dot_dimension_numbers<[1], [0], [0], [1], [0, 0, 1, 1], [], []>} : vector<64x4xbf16>, vector<4x128xbf16>, vector<64x128xf32> -> vector<64x128xf32>
    %c0_3 = arith.constant 0 : index
    %c0_4 = arith.constant 0 : index
    %3 = vector.load %arg5[%c0_3, %c0_4] : memref<1x128xf32, #tpu.memory_space<vmem>>, vector<1x128xf32>
    %4 = vector.broadcast %3 : vector<1x128xf32> to vector<64x128xf32>
    %5 = arith.addf %2, %4 : vector<64x128xf32>
    %6 = arith.truncf %5 : vector<64x128xf32> to vector<64x128xbf16>
    %c0_5 = arith.constant 0 : index
    %c0_6 = arith.constant 0 : index
    %7 = vector.load %arg6[%c0_5, %c0_6] : memref<64x128xbf16, #tpu.memory_space<vmem>>, vector<64x128xbf16>
    tpu.vector_store %arg6[%c0_5, %c0_6], %6 {strides = array<i32>} : memref<64x128xbf16, #tpu.memory_space<vmem>>, vector<64x128xbf16>,
    return
  }
  func.func @transform_0(%arg0: i32, %arg1: i32, %arg2: i32) -> (i32, i32) {
    %c0_i32 = arith.constant 0 : i32
    return %arg0, %arg2 : i32, i32
  }
  func.func @transform_1(%arg0: i32, %arg1: i32, %arg2: i32) -> (i32, i32) {
    %c0_i32 = arith.constant 0 : i32
    %c0_i32_0 = arith.constant 0 : i32
    %c0_i32_1 = arith.constant 0 : i32
    return %c0_i32, %c0_i32_0 : i32, i32
  }
  func.func @transform_2(%arg0: i32, %arg1: i32, %arg2: i32) -> (i32, i32) {
    %c0_i32 = arith.constant 0 : i32
    %c0_i32_0 = arith.constant 0 : i32
    return %c0_i32, %arg1 : i32, i32
  }
  func.func @transform_3(%arg0: i32, %arg1: i32, %arg2: i32) -> (i32, i32) {
    %c0_i32 = arith.constant 0 : i32
    return %arg0, %arg1 : i32, i32
  }
}

</mosaic_0001>

<bundles_post_ra>
// kernel: tpu_custom_call.1
= control target key start
LH: loop header
LB: loop body
LE: loop exit
PB: predicated region body
PF: predicated region fallthrough
CT: control target
= control target key end

     0   :  { %8 = vsyncpa [#allocation3], 0  ;;  %s852_s0 = inlined_call_operand.vmem [shape: bf16[128,4], index: 0, kind: input, shape index: {}]   ;;  %s853_s1 = inlined_call_operand.vmem [shape: bf16[4,128], index: 1, kind: input, shape index: {}]   ;;  %s854_s2 = inlined_call_operand.vmem [shape: f32[1,128], index: 2, kind: input, shape index: {}]   ;;  %s855_s3 = inlined_call_operand.hbm [shape: bf16[128,128], index: 3, kind: output, shape index: {}]  }
   0x1   :  { %10 = vsyncpa [#allocation3 + $0x1], 0  ;;  %s728_s12 = smov 0   ;;  %s730_s13 = smov 0  }
   0x2   :  { %s732_s14 = smov 0   ;;  %s734_s15 = smov 0  }
   0x3   :  { %s736_s16 = smov 0   ;;  %s738_s17 = smov 0  }
   0x4 LB: > { %s482_s18 = sadd.s32 4294967295, %s703_s17   ;;  %s483_s19 = sadd.s32 4294967294, %s703_s17   ;;  %s703_s17 = sphi %s738_s17, %s16_s17   ;;  %s699_s16 = sphi %s736_s16, %s862_s16   ;;  %s695_s15 = sphi %s734_s15, %s861_s15   ;;  %s691_s14 = sphi %s732_s14, %s860_s14   ;;  %s687_s13 = sphi %s730_s13, %s859_s13   ;;  %s683_s12 = sphi %s728_s12, %s858_s12  }
   0x5   : > { %s35_s20 = sadd.s32 1, %s699_s16  ;;  %s119_s21 = sadd.s32 1, %s691_s14 }
   0x6   : > { %p37_p0 = scmp.ge.s32.totalorder %s35_s20, 2  ;;  %p129_p1 = scmp.ne.s32.totalorder %s691_s14, %s687_s13 }
   0x7   : > { %p130_p2 = scmp.eq.s32.totalorder %s482_s18, 1  ;;  %p135_p3 = scmp.ne.s32.totalorder %s687_s13, %s683_s12 }
   0x8   : > { %s864_s20 = smov (%p37_p0, %s35_s20), 0  ;;  %p136_p5 = scmp.eq.s32.totalorder %s483_s19, 1 }
   0x9   : > { %p768_p4 = por %p130_p2, %p129_p1  ;;  %s114_s23 = ssub.s32 %s699_s16, %s864_s20 }
   0xa   : > { %p487_p6 = scmp.ge.s32.totalorder %s703_s17, 1  ;;  %p117_p7 = scmp.eq.s32.totalorder %s114_s23, 0 }
   0xb   : > { %p775_p8 = por %p136_p5, %p135_p3  ;;  %p175_p9 = scmp.lt.s32.totalorder %s703_s17, 3 }
   0xc   : > { %s781_s25 = scalar_select %p117_p7, %s691_s14, %s119_s21  }
   0xd   : > { %p176_p10 = pnand %p487_p6, %p175_p9 }
   0xe   : > { %v227_v0 = vld [vmem:[%s853_s1] sm:$0x3] (!%p176_p10)  ;;  %vm268_vm0 = vcmask (!%p176_p10), 1041408   ;;  %s489_s28 = sshll.u32 (!%p176_p10), %s695_s15, 3  ;;  %vm255_vm1 = vcmask (!%p176_p10), 31744   ;;  %s202_s6 = sand.u32 (!%p176_p10), 1, %s687_s13  }
   0xf   : > { %179 = sbr.rel (%p176_p10) target bundleno = 261 (0x105), region = 32  ;;  %562 = vmatprep.subr.msk.bf16.mxu0 (!%p176_p10), %vm268_vm0, %v227_v0  ;;  %563 = vmatprep.subr.msk.bf16.mxu1 (!%p176_p10), %vm268_vm0, %v227_v0  ;;  %v270_v1 = vsel (!%p176_p10), %vm268_vm0, %v227_v0, 0  ;;  %p206_p11 = scmp.lt.s32.totalorder (!%p176_p10), %s489_s28, 15  ;;  %v491_v7 = vld [vmem:[%s854_s2] ss:$0 sm:$0xff] (!%p176_p10) }
  0x10   : > { %551 = vmatpush3.bf16.msra.mxu0 (!%p176_p10), %v270_v1  ;;  %561 = vmatpush3.bf16.msra.mxu1 (!%p176_p10), %v270_v1  ;;  %s488_s7 = sshll.u32 (!%p176_p10), %s202_s6, 5  ;;  %s521_s18 = sshll.u32 (!%p176_p10), %s695_s15, 9 }
  0x11   : > { %s204_s10 = scalar_lea.vmem (!%p176_p10), [#allocation2], %s488_s7  ;;  %s802_s15 = scalar_lea.hbm (!%p176_p10), %s855_s3, %s521_s18 }
  0x12   : > { %s392_s11 = sshll.u32 (!%p176_p10), %s204_s10, 4  ;;  %s806_s23 = scalar_lea.sflag (!%p176_p10), [#allocation3], %s202_s6  ;;  %s797_s11 = int_to_ptr.vmem [resolvable:$true] %s392_s11 }
  0x13   : > { %s625_s26 = scalar_lea.vmem (!%p176_p10), %s797_s11, 512  ;;  %s705_s27 = smov (!%p176_p10), [#allocation2]  }
  0x14   : > { %p626_p12 = scmp.ne.s32.totalorder (!%p176_p10), %s797_s11, %s625_s26 }
  0x16   : > { %s866_s28 = smov (!%p206_p11, %s489_s28), 15  ;;  %p627_p13 = pnand %p626_p12, %p768_p4 }
  0x17   : > { %s490_s29 = sshll.u32 %s866_s28, 2  ;;  %s629_s28 = sshll.u32 %s705_s27, 4  ;;  %s630_s28 = int_to_ptr.vmem [resolvable:$false] %s629_s28 }
  0x18   : > { %s212_s5 = scalar_lea.vmem %s852_s0, %s490_s29  ;;  %p628_p0 = pneg %p627_p13 }
  0x19   : > { %v621_v2 = vld [vmem:[%s212_s5] sm:$0xff]   ;;  %v622_v3 = vld [vmem:[%s212_s5 + $0x10] sm:$0xff]   ;;  %v623_v4 = vld [vmem:[%s212_s5 + $0x8] sm:$0xff]   ;;  %s631_s29 = scalar_lea.vmem %s630_s28, 1024  ;;  %p632_p1 = scmp.lt.s32.totalorder %s797_s11, %s630_s28 }
  0x1a   : > { %552 = vmatprep.mubr.msk.bf16.mxu0 %vm255_vm1, %v621_v2  ;;  %556 = vmatprep.mubr.msk.bf16.mxu1 %vm255_vm1, %v622_v3  ;;  %v624_v5 = vld [vmem:[%s212_s5 + $0x18] sm:$0xff]   ;;  %p633_p2 = scmp.lt.s32.totalorder %s631_s29, %s625_s26 }
  0x1b   : > { %553 = vmatmul.mubr.msk.bf16.vlgmr.msra.gmra.mrb[0].mxu0 %vm255_vm1, %v623_v4  ;;  %557 = vmatmul.mubr.msk.bf16.vlgmr.msra.gmra.mrb[0].mxu1 %vm255_vm1, %v624_v5 }
  0x1c   : > { %p634_p3 = por %p633_p2, %p632_p1 }
  0x1e   : > { %p635_p5 = pnand %p634_p3, %p628_p0 }
  0xee   : > { %v554_v6 = vpop.f32.mrb[0].mxu0  ;;  %v558_v8 = vpop.f32.mrb[0].mxu1 }
  0xef   : > { %v306_v9 = vpop.f32.mrb[1].mxu0  ;;  %v322_v10 = vpop.f32.mrb[1].mxu1  ;;  %v315_v12 = vadd.f32 %v554_v6, %v491_v7  ;;  %v331_v16 = vadd.f32 %v558_v8, %v491_v7 }
  0xf0   : > { %v555_v11 = vpop.f32.mrb[2].mxu0  ;;  %v559_v14 = vpop.f32.mrb[2].mxu1  ;;  %v307_v17 = vadd.f32 %v491_v7, %v306_v9  ;;  %v323_v21 = vadd.f32 %v491_v7, %v322_v10 }
  0xf1   : > { %v318_v13 = vadd.f32 %v555_v11, %v491_v7  ;;  %v309_v15 = vpop.f32.mrb[3].mxu0  ;;  %v334_v18 = vadd.f32 %v559_v14, %v491_v7  ;;  %v325_v20 = vpop.f32.mrb[3].mxu1 }
  0xf2   : > { %v310_v19 = vadd.f32 %v491_v7, %v309_v15  ;;  %v326_v23 = vadd.f32 %v491_v7, %v325_v20 }
  0xf3   : > { %v530_v22 = vpack.c.bf16 %v318_v13, %v315_v12  ;;  %v540_v24 = vpack.c.bf16 %v334_v18, %v331_v16 }
  0xf4   : > { %v525_v25 = vpack.c.bf16 %v310_v19, %v307_v17  ;;  %v535_v26 = vpack.c.bf16 %v326_v23, %v323_v21 }
  0xf5   : > { %542 = vst [vmem:[%s204_s10 + $0x8] sm:$0xff] %v530_v22   ;;  %544 = vst [vmem:[%s204_s10 + $0x18] sm:$0xff] %v540_v24  }
  0xf6   : > { %526 = vst [vmem:[%s204_s10] sm:$0xff] %v525_v25   ;;  %543 = vst [vmem:[%s204_s10 + $0x10] sm:$0xff] %v535_v26  }
  0xf7   : > { %638 = shalt.err (!%p635_p5)
}
  0xf8   : > { %s639_s30 = scalar_lea.hbm %s802_s15, 512  ;;  %s643_s6 = scalar_lea.hbm %s855_s3, 1024 }
  0xf9   : > { %p640_p6 = scmp.ne.s32.totalorder %s802_s15, %s639_s30  ;;  %p644_p10 = scmp.lt.u32.totalorder %s802_s15, %s855_s3 }
  0xfa   : > { %p645_p11 = scmp.lt.u32.totalorder %s643_s6, %s639_s30  ;;  %p647_p13 = scmp.lt.u32.totalorder %s639_s30, %s802_s15 }
  0xfb   : > { %p641_p7 = pnand %p640_p6, %p768_p4 }
  0xfc   : > { %p646_p12 = por %p645_p11, %p644_p10 }
  0xfd   : > { %p642_p9 = pneg %p641_p7 }
  0xfe   : > { %p648_p0 = por %p647_p13, %p646_p12 }
 0x100   : > { %p649_p1 = pnand %p648_p0, %p642_p9 }
 0x102   : > { %652 = shalt.err (!%p649_p1)
}
 0x103   : > { %s706_s9 = smov 64   ;;  %s707_s10 = smov 4  }
 0x104   : > { %564 = dma.vmem_to_hbm [thread:$0]  (%p768_p4), %s797_s11, 512, %s802_s15, %s806_s23, %s706_s9, %s706_s9, %s707_s10  }
 0x105 PF: > { %p570_p2 = scmp.ge.s32.totalorder %s703_s17, 2  ;;  %s407_s18 = sand.u32 1, %s683_s12  }
 0x106   : > { %s408_s19 = scalar_lea.sflag [#allocation3], %s407_s18 }
 0x107   : > { %p567_p3 = pnand %p570_p2, %p775_p8 }
 0x109   : > { %678 = dma.done.wait (!%p567_p3), %s408_s19, 512  }
 0x10a   : > { %680 = vsyncadd (!%p567_p3), %s408_s19, 4294966784  ;;  %s16_s17 = sadd.s32 1, %s703_s17   ;;  %s858_s12 = smov %s687_s13 }
 0x10b   : > { %p13_p5 = scmp.ge.s32.totalorder %s16_s17, 4   ;;  %s859_s13 = smov %s691_s14 }
 0x10c   : > { %s860_s14 = smov %s781_s25  ;;  %s861_s15 = smov %s699_s16 }
 0x10d   : > { %s862_s16 = smov %s864_s20  ;;  %15 = sbr.rel (!%p13_p5) target bundleno = 4 (0x4), region = 70 }
 0x114   :  { %413 = vsyncpa [#allocation3], 1 }
 0x115   :  { %415 = vsyncpa [#allocation3 + $0x1], 1 }

</bundles_post_ra>
